<compile_context>
chip_gen: v6e
topology: v6e:2x2x1
jax: 0.10.0
libtpu: 0.0.40
codegen_flags: <defaults>
</compile_context>

<pallas_src>
import functools
import math

import jax
import jax.numpy as jnp
from jax.experimental import pallas as pl
from jax.experimental.pallas import tpu as pltpu

_LANES = 128
_MAX_BLOCK_ROWS = 2048          # (2048, 128) f32 = 1 MiB per f32 input block


def _tensorcores_per_device():
    """Best-effort TensorCore count per device (2 on v7x, 1 on v5e/v6e)."""
    try:
        info = pltpu.get_tpu_info()
    except Exception:
        return 1
    for name in ("num_cores", "core_count", "num_tensorcores",
                 "tensorcores_per_chip", "cores_per_chip"):
        v = getattr(info, name, None)
        if isinstance(v, int) and 1 <= v <= 8:
            return v
    return 1


def _sublane_align(*dtypes):
    """Smallest sublane multiple such that every input dtype tiles cleanly."""
    a = 8
    for dt in dtypes:
        size = jnp.dtype(dt).itemsize
        if size == 2:
            a = max(a, 16)
        elif size <= 1:
            a = max(a, 32)
    return a


def _make_ordice_sums_kernel(thresholds, block_rows):
    """Accumulates, per threshold t, three (8,128) partial-sum tiles:
         rows [24t,    24t+8)  : sum over block of sigmoid(x-t)*(tgt>=t)*mask
         rows [24t+8,  24t+16) : sum over block of (tgt>=t)*mask
         rows [24t+16, 24t+24) : sum over block of sigmoid(x-t)*mask
       The final sublane+lane fold and the tiny dice formula run in JAX glue."""
    exp_thr = tuple(float(math.exp(min(max(t, -60.0), 60.0))) for t in thresholds)
    sub = block_rows // 8

    def kernel(x_ref, t_ref, m_ref, out_ref):
        step = pl.program_id(1)

        @pl.when(step == 0)
        def _init():
            out_ref[...] = jnp.zeros_like(out_ref)

        # Cast to f32 AFTER the block load — HBM traffic stays at native width.
        x = x_ref[...].astype(jnp.float32)
        tgt = t_ref[...].astype(jnp.float32)
        m = m_ref[...].astype(jnp.float32)

        # One transcendental per element (EUP slot); each per-threshold sigmoid
        # becomes a cheap reciprocal: sigmoid(x - t) = 1 / (1 + exp(-x) * exp(t)).
        # No clamp: exp(-x) over/underflow still gives the correct sigmoid limit.
        e = jnp.exp(-x)

        def fold(v):
            # (block_rows,128) -> (8,128): whole-vreg VPU adds, no XLU, no
            # partial-sublane stores (reshape regroups whole (8,128) tiles only).
            return jnp.sum(v.reshape(sub, 8, _LANES), axis=0)

        for ti, thr in enumerate(thresholds):
            sig = 1.0 / (1.0 + e * exp_thr[ti])
            # (target >= t) * mask, exact for arbitrary (non-binary) masks.
            cls_m = jnp.where(tgt >= thr, m, 0.0)
            base = 24 * ti
            out_ref[pl.ds(base, 8), :] += fold(sig * cls_m)      # intersect
            out_ref[pl.ds(base + 8, 8), :] += fold(cls_m)        # y_sum
            out_ref[pl.ds(base + 16, 8), :] += fold(sig * m)     # z_sum

    return kernel


def _partial_sums_jax(x, t, m, thresholds):
    """Plain-JAX partial sums for the (small) un-tiled remainder."""
    x = x.astype(jnp.float32)
    t = t.astype(jnp.float32)
    m = m.astype(jnp.float32)
    parts = []
    for thr in thresholds:
        sig = jax.nn.sigmoid(x - thr)
        cls_m = jnp.where(t >= thr, m, 0.0)
        parts.extend([jnp.sum(sig * cls_m), jnp.sum(cls_m), jnp.sum(sig * m)])
    return jnp.stack(parts).astype(jnp.float32)


@functools.partial(jax.jit, static_argnames=("thresholds", "cosh_log", "max_block_rows"))
def ordice_loss_diff(inputs, target, mask, *, thresholds, cosh_log=False,
                     max_block_rows=_MAX_BLOCK_ROWS):
    thresholds = tuple(float(t) for t in thresholds)
    nt = len(thresholds)
    acc_rows = 24 * nt                      # 3 terms x (8,128) tile per threshold

    x = inputs.reshape(-1)
    t = target.reshape(-1)
    m = mask.reshape(-1)
    # i1 blocks are awkward for Mosaic; a 1-byte int copy is cheap and keeps the
    # kernel reading 1 B/element.
    if t.dtype == jnp.bool_:
        t = t.astype(jnp.int8)
    if m.dtype == jnp.bool_:
        m = m.astype(jnp.int8)
    n = x.shape[0]

    rows = n // _LANES                       # full 128-lane rows
    align = _sublane_align(x.dtype, t.dtype, m.dtype)

    lane_sums = jnp.zeros((3 * nt,), jnp.float32)
    covered_rows = 0

    if rows >= align:
        # ---- static tiling (all Python ints, decided at trace time) ---------
        nc = _tensorcores_per_device()       # 2 only on multi-TC chips (v7x)
        if nc > 1 and rows < nc * align:
            nc = 1
        per_core = rows // nc
        mbr = max(align, (max_block_rows // align) * align)
        chunks = -(-per_core // mbr)                              # ceil
        block_rows = max(align, ((per_core // chunks) // align) * align)
        steps_pc = per_core // block_rows
        covered_rows = nc * steps_pc * block_rows

        main_len = rows * _LANES             # lane-aligned prefix (reshape is free
        x2 = (x if main_len == n else x[:main_len]).reshape(rows, _LANES)
        t2 = (t if main_len == n else t[:main_len]).reshape(rows, _LANES)
        m2 = (m if main_len == n else m[:main_len]).reshape(rows, _LANES)

        kernel = _make_ordice_sums_kernel(thresholds, block_rows)
        in_spec = pl.BlockSpec((block_rows, _LANES),
                               lambda c, i: (c * steps_pc + i, 0))
        out_spec = pl.BlockSpec((acc_rows, _LANES), lambda c, i: (c, 0))

        if nc > 1:
            # Genuinely shard the core axis across v7x's TensorCores.
            dim_sem = (getattr(pltpu, "CORE_PARALLEL", "parallel"),
                       getattr(pltpu, "ARBITRARY", "arbitrary"))
        else:
            dim_sem = ("arbitrary", "arbitrary")

        sums = pl.pallas_call(
            kernel,
            out_shape=jax.ShapeDtypeStruct((nc * acc_rows, _LANES), jnp.float32),
            grid_spec=pltpu.PrefetchScalarGridSpec(
                num_scalar_prefetch=0,
                grid=(nc, steps_pc),
                in_specs=[in_spec, in_spec, in_spec],
                out_specs=out_spec,
            ),
            compiler_params=pltpu.CompilerParams(
                dimension_semantics=dim_sem,
                vmem_limit_bytes=32 * 1024 * 1024),
        )(x2, t2, m2)

        sums = sums.reshape(nc, 3 * nt, 8, _LANES)
        lane_sums = jnp.sum(sums, axis=(0, 2, 3))

    # Ragged remainder (< one block of rows plus the <128-element tail): plain JAX.
    rem = covered_rows * _LANES
    if rem < n:
        lane_sums = lane_sums + _partial_sums_jax(x[rem:], t[rem:], m[rem:],
                                                  thresholds)

    smooth = 1e-08
    intersect = lane_sums[0::3]
    y_sum = lane_sums[1::3]
    z_sum = lane_sums[2::3]
    dice = 1.0 - (2.0 * intersect + smooth) / (z_sum + y_sum + smooth)
    if cosh_log:
        dice = jnp.log(jnp.cosh(dice))
    return jnp.sum(dice) / nt
    # TODO(synk): ts_loss / class_mse / add_loss / weight are dead code in the
    # reference module's forward(), so they are not ported.


def _ordice_loss_ref(inputs, target, mask, thresholds, cosh_log=False):
    """Pure-JAX reference mirroring the PyTorch forward exactly."""
    smooth = 1e-08
    inputs = inputs.astype(jnp.float32)
    target = target.astype(jnp.float32)
    mask = mask.astype(jnp.float32)
    loss = 0.0
    for thr in thresholds:
        sig = jax.nn.sigmoid(inputs - thr)
        cls = (target >= thr).astype(jnp.float32)
        intersect = jnp.sum(sig * cls * mask)
        y_sum = jnp.sum(cls * mask)
        z_sum = jnp.sum(sig * mask)
        dice = 1.0 - (2.0 * intersect + smooth) / (z_sum + y_sum + smooth)
        if cosh_log:
            dice = jnp.log(jnp.cosh(dice))
        loss = loss + dice
    return loss / len(thresholds)


if __name__ == "__main__":
    # "Module config": thresholds / cosh_log play the role of __init__ params.
    thresholds = (0.2, 0.5, 0.8)

    key = jax.random.PRNGKey(0)
    k1, k2, k3 = jax.random.split(key, 3)

    # Case 1: f32 inputs, (B, H, W) = (2, 64, 64) -> 8192 elems -> 64 lane rows.
    B, H, W = 2, 64, 64
    inputs = jax.random.normal(k1, (B, H, W), dtype=jnp.float32)
    target = jax.random.uniform(k2, (B, H, W), dtype=jnp.float32)
    mask = (jax.random.uniform(k3, (B, H, W)) > 0.3).astype(jnp.float32)

    for cosh_log in (False, True):
        loss = ordice_loss_diff(inputs, target, mask,
                                thresholds=thresholds, cosh_log=cosh_log)
        loss = jax.block_until_ready(loss)
        ref = _ordice_loss_ref(inputs, target, mask, thresholds, cosh_log)
        assert jnp.allclose(loss, ref, rtol=1e-4, atol=1e-5), (cosh_log, loss, ref)

    # Case 2: native low-precision dtypes streamed straight into the kernel
    # (bf16 logits / bf16 target / int8 mask) -> exercises the in-kernel casts
    # and the 32-row sublane-alignment path.
    inputs_bf = inputs.astype(jnp.bfloat16)
    target_bf = target.astype(jnp.bfloat16)
    mask_i8 = mask.astype(jnp.int8)
    loss = jax.block_until_ready(
        ordice_loss_diff(inputs_bf, target_bf, mask_i8, thresholds=thresholds))
    ref = _ordice_loss_ref(inputs_bf, target_bf, mask_i8, thresholds)
    assert jnp.allclose(loss, ref, rtol=1e-4, atol=1e-5), (loss, ref)

    # Case 3: odd size + forced multi-step grid -> exercises accumulation across
    # grid steps (init at step 0) and the plain-JAX ragged-tail path.
    k4, k5, k6 = jax.random.split(jax.random.PRNGKey(1), 3)
    shp = (2, 63, 65)
    inputs3 = jax.random.normal(k4, shp, dtype=jnp.float32)
    target3 = jax.random.uniform(k5, shp, dtype=jnp.float32)
    mask3 = (jax.random.uniform(k6, shp) > 0.3).astype(jnp.float32)
    loss = jax.block_until_ready(
        ordice_loss_diff(inputs3, target3, mask3, thresholds=thresholds,
                         max_block_rows=32))
    ref = _ordice_loss_ref(inputs3, target3, mask3, thresholds)
    assert jnp.allclose(loss, ref, rtol=1e-4, atol=1e-5), (loss, ref)

    print("KERNEL_OK")
</pallas_src>

<mosaic_0001>
module attributes {stable_mosaic.version = 11 : i64} {
  func.func @kernel(%arg0: i32, %arg1: i32, %arg2: memref<64x128xf32, #tpu.memory_space<vmem>>, %arg3: memref<64x128xf32, #tpu.memory_space<vmem>>, %arg4: memref<64x128xf32, #tpu.memory_space<vmem>>, %arg5: memref<72x128xf32, #tpu.memory_space<vmem>>) attributes {dimension_semantics = [#tpu.dimension_semantics<arbitrary>, #tpu.dimension_semantics<arbitrary>], iteration_bounds = array<i64: 1, 1>, scalar_prefetch = 0 : i64, scratch_operands = 0 : i64, tpu.core_type = #tpu.core_type<tc>, window_params = [{transform_indices = @transform_0, window_bounds = array<i64: 64, 128>}, {transform_indices = @transform_1, window_bounds = array<i64: 64, 128>}, {transform_indices = @transform_2, window_bounds = array<i64: 64, 128>}, {transform_indices = @transform_3, window_bounds = array<i64: 72, 128>}]} {
    %c0_i32 = arith.constant 0 : i32
    %0 = arith.cmpi eq, %arg1, %c0_i32 : i32
    %1 = arith.extui %0 : i1 to i32
    %c0_i32_0 = arith.constant 0 : i32
    %2 = arith.cmpi ne, %1, %c0_i32_0 : i32
    scf.if %2 {
      %cst_58 = arith.constant 0.000000e+00 : f32
      %90 = vector.broadcast %cst_58 : f32 to vector<72x128xf32>
      %c0_59 = arith.constant 0 : index
      %c0_60 = arith.constant 0 : index
      %91 = vector.load %arg5[%c0_59, %c0_60] : memref<72x128xf32, #tpu.memory_space<vmem>>, vector<72x128xf32>
      tpu.vector_store %arg5[%c0_59, %c0_60], %90 {strides = array<i32>} : memref<72x128xf32, #tpu.memory_space<vmem>>, vector<72x128xf32>,
    } else {
    }
    %c0 = arith.constant 0 : index
    %c0_1 = arith.constant 0 : index
    %3 = vector.load %arg2[%c0, %c0_1] : memref<64x128xf32, #tpu.memory_space<vmem>>, vector<64x128xf32>
    %c0_2 = arith.constant 0 : index
    %c0_3 = arith.constant 0 : index
    %4 = vector.load %arg3[%c0_2, %c0_3] : memref<64x128xf32, #tpu.memory_space<vmem>>, vector<64x128xf32>
    %c0_4 = arith.constant 0 : index
    %c0_5 = arith.constant 0 : index
    %5 = vector.load %arg4[%c0_4, %c0_5] : memref<64x128xf32, #tpu.memory_space<vmem>>, vector<64x128xf32>
    %cst = arith.constant 0.000000e+00 : f32
    %6 = vector.broadcast %cst : f32 to vector<64x128xf32>
    %7 = arith.subf %6, %3 : vector<64x128xf32>
    %8 = math.exp %7 : vector<64x128xf32>
    %cst_6 = arith.constant 1.22140276 : f32
    %9 = vector.broadcast %cst_6 : f32 to vector<64x128xf32>
    %10 = arith.mulf %8, %9 : vector<64x128xf32>
    %cst_7 = arith.constant 1.000000e+00 : f32
    %11 = vector.broadcast %cst_7 : f32 to vector<64x128xf32>
    %12 = arith.addf %11, %10 : vector<64x128xf32>
    %cst_8 = arith.constant 1.000000e+00 : f32
    %13 = vector.broadcast %cst_8 : f32 to vector<64x128xf32>
    %14 = arith.divf %13, %12 : vector<64x128xf32>
    %cst_9 = arith.constant 2.000000e-01 : f32
    %15 = vector.broadcast %cst_9 : f32 to vector<64x128xf32>
    %16 = arith.cmpf oge, %4, %15 : vector<64x128xf32>
    %cst_10 = arith.constant 0.000000e+00 : f32
    %17 = vector.broadcast %cst_10 : f32 to vector<64x128xf32>
    %18 = arith.select %16, %5, %17 : vector<64x128xi1>, vector<64x128xf32>
    %c0_11 = arith.constant 0 : index
    %c0_12 = arith.constant 0 : index
    %19 = vector.load %arg5[%c0_11, %c0_12] : memref<72x128xf32, #tpu.memory_space<vmem>>, vector<8x128xf32>
    %20 = arith.mulf %14, %18 : vector<64x128xf32>
    %21 = vector.shape_cast %20 : vector<64x128xf32> to vector<8x8x128xf32>
    %cst_13 = arith.constant dense<0.000000e+00> : vector<8x128xf32>
    %22 = vector.multi_reduction <add>, %21, %cst_13 [0] : vector<8x8x128xf32> to vector<8x128xf32>
    %23 = arith.addf %19, %22 : vector<8x128xf32>
    %c0_14 = arith.constant 0 : index
    %c0_15 = arith.constant 0 : index
    %24 = vector.load %arg5[%c0_14, %c0_15] : memref<72x128xf32, #tpu.memory_space<vmem>>, vector<8x128xf32>
    tpu.vector_store %arg5[%c0_14, %c0_15], %23 {strides = array<i32>} : memref<72x128xf32, #tpu.memory_space<vmem>>, vector<8x128xf32>,
    %c8 = arith.constant 8 : index
    %c0_16 = arith.constant 0 : index
    %25 = vector.load %arg5[%c8, %c0_16] : memref<72x128xf32, #tpu.memory_space<vmem>>, vector<8x128xf32>
    %26 = vector.shape_cast %18 : vector<64x128xf32> to vector<8x8x128xf32>
    %cst_17 = arith.constant dense<0.000000e+00> : vector<8x128xf32>
    %27 = vector.multi_reduction <add>, %26, %cst_17 [0] : vector<8x8x128xf32> to vector<8x128xf32>
    %28 = arith.addf %25, %27 : vector<8x128xf32>
    %c8_18 = arith.constant 8 : index
    %c0_19 = arith.constant 0 : index
    %29 = vector.load %arg5[%c8_18, %c0_19] : memref<72x128xf32, #tpu.memory_space<vmem>>, vector<8x128xf32>
    tpu.vector_store %arg5[%c8_18, %c0_19], %28 {strides = array<i32>} : memref<72x128xf32, #tpu.memory_space<vmem>>, vector<8x128xf32>,
    %c16 = arith.constant 16 : index
    %c0_20 = arith.constant 0 : index
    %30 = vector.load %arg5[%c16, %c0_20] : memref<72x128xf32, #tpu.memory_space<vmem>>, vector<8x128xf32>
    %31 = arith.mulf %14, %5 : vector<64x128xf32>
    %32 = vector.shape_cast %31 : vector<64x128xf32> to vector<8x8x128xf32>
    %cst_21 = arith.constant dense<0.000000e+00> : vector<8x128xf32>
    %33 = vector.multi_reduction <add>, %32, %cst_21 [0] : vector<8x8x128xf32> to vector<8x128xf32>
    %34 = arith.addf %30, %33 : vector<8x128xf32>
    %c16_22 = arith.constant 16 : index
    %c0_23 = arith.constant 0 : index
    %35 = vector.load %arg5[%c16_22, %c0_23] : memref<72x128xf32, #tpu.memory_space<vmem>>, vector<8x128xf32>
    tpu.vector_store %arg5[%c16_22, %c0_23], %34 {strides = array<i32>} : memref<72x128xf32, #tpu.memory_space<vmem>>, vector<8x128xf32>,
    %cst_24 = arith.constant 1.64872122 : f32
    %36 = vector.broadcast %cst_24 : f32 to vector<64x128xf32>
    %37 = arith.mulf %8, %36 : vector<64x128xf32>
    %cst_25 = arith.constant 1.000000e+00 : f32
    %38 = vector.broadcast %cst_25 : f32 to vector<64x128xf32>
    %39 = arith.addf %38, %37 : vector<64x128xf32>
    %cst_26 = arith.constant 1.000000e+00 : f32
    %40 = vector.broadcast %cst_26 : f32 to vector<64x128xf32>
    %41 = arith.divf %40, %39 : vector<64x128xf32>
    %cst_27 = arith.constant 5.000000e-01 : f32
    %42 = vector.broadcast %cst_27 : f32 to vector<64x128xf32>
    %43 = arith.cmpf oge, %4, %42 : vector<64x128xf32>
    %cst_28 = arith.constant 0.000000e+00 : f32
    %44 = vector.broadcast %cst_28 : f32 to vector<64x128xf32>
    %45 = arith.select %43, %5, %44 : vector<64x128xi1>, vector<64x128xf32>
    %c24 = arith.constant 24 : index
    %c0_29 = arith.constant 0 : index
    %46 = vector.load %arg5[%c24, %c0_29] : memref<72x128xf32, #tpu.memory_space<vmem>>, vector<8x128xf32>
    %47 = arith.mulf %41, %45 : vector<64x128xf32>
    %48 = vector.shape_cast %47 : vector<64x128xf32> to vector<8x8x128xf32>
    %cst_30 = arith.constant dense<0.000000e+00> : vector<8x128xf32>
    %49 = vector.multi_reduction <add>, %48, %cst_30 [0] : vector<8x8x128xf32> to vector<8x128xf32>
    %50 = arith.addf %46, %49 : vector<8x128xf32>
    %c24_31 = arith.constant 24 : index
    %c0_32 = arith.constant 0 : index
    %51 = vector.load %arg5[%c24_31, %c0_32] : memref<72x128xf32, #tpu.memory_space<vmem>>, vector<8x128xf32>
    tpu.vector_store %arg5[%c24_31, %c0_32], %50 {strides = array<i32>} : memref<72x128xf32, #tpu.memory_space<vmem>>, vector<8x128xf32>,
    %c32 = arith.constant 32 : index
    %c0_33 = arith.constant 0 : index
    %52 = vector.load %arg5[%c32, %c0_33] : memref<72x128xf32, #tpu.memory_space<vmem>>, vector<8x128xf32>
    %53 = vector.shape_cast %45 : vector<64x128xf32> to vector<8x8x128xf32>
    %cst_34 = arith.constant dense<0.000000e+00> : vector<8x128xf32>
    %54 = vector.multi_reduction <add>, %53, %cst_34 [0] : vector<8x8x128xf32> to vector<8x128xf32>
    %55 = arith.addf %52, %54 : vector<8x128xf32>
    %c32_35 = arith.constant 32 : index
    %c0_36 = arith.constant 0 : index
    %56 = vector.load %arg5[%c32_35, %c0_36] : memref<72x128xf32, #tpu.memory_space<vmem>>, vector<8x128xf32>
    tpu.vector_store %arg5[%c32_35, %c0_36], %55 {strides = array<i32>} : memref<72x128xf32, #tpu.memory_space<vmem>>, vector<8x128xf32>,
    %c40 = arith.constant 40 : index
    %c0_37 = arith.constant 0 : index
    %57 = vector.load %arg5[%c40, %c0_37] : memref<72x128xf32, #tpu.memory_space<vmem>>, vector<8x128xf32>
    %58 = arith.mulf %41, %5 : vector<64x128xf32>
    %59 = vector.shape_cast %58 : vector<64x128xf32> to vector<8x8x128xf32>
    %cst_38 = arith.constant dense<0.000000e+00> : vector<8x128xf32>
    %60 = vector.multi_reduction <add>, %59, %cst_38 [0] : vector<8x8x128xf32> to vector<8x128xf32>
    %61 = arith.addf %57, %60 : vector<8x128xf32>
    %c40_39 = arith.constant 40 : index
    %c0_40 = arith.constant 0 : index
    %62 = vector.load %arg5[%c40_39, %c0_40] : memref<72x128xf32, #tpu.memory_space<vmem>>, vector<8x128xf32>
    tpu.vector_store %arg5[%c40_39, %c0_40], %61 {strides = array<i32>} : memref<72x128xf32, #tpu.memory_space<vmem>>, vector<8x128xf32>,
    %cst_41 = arith.constant 2.22554088 : f32
    %63 = vector.broadcast %cst_41 : f32 to vector<64x128xf32>
    %64 = arith.mulf %8, %63 : vector<64x128xf32>
    %cst_42 = arith.constant 1.000000e+00 : f32
    %65 = vector.broadcast %cst_42 : f32 to vector<64x128xf32>
    %66 = arith.addf %65, %64 : vector<64x128xf32>
    %cst_43 = arith.constant 1.000000e+00 : f32
    %67 = vector.broadcast %cst_43 : f32 to vector<64x128xf32>
    %68 = arith.divf %67, %66 : vector<64x128xf32>
    %cst_44 = arith.constant 8.000000e-01 : f32
    %69 = vector.broadcast %cst_44 : f32 to vector<64x128xf32>
    %70 = arith.cmpf oge, %4, %69 : vector<64x128xf32>
    %cst_45 = arith.constant 0.000000e+00 : f32
    %71 = vector.broadcast %cst_45 : f32 to vector<64x128xf32>
    %72 = arith.select %70, %5, %71 : vector<64x128xi1>, vector<64x128xf32>
    %c48 = arith.constant 48 : index
    %c0_46 = arith.constant 0 : index
    %73 = vector.load %arg5[%c48, %c0_46] : memref<72x128xf32, #tpu.memory_space<vmem>>, vector<8x128xf32>
    %74 = arith.mulf %68, %72 : vector<64x128xf32>
    %75 = vector.shape_cast %74 : vector<64x128xf32> to vector<8x8x128xf32>
    %cst_47 = arith.constant dense<0.000000e+00> : vector<8x128xf32>
    %76 = vector.multi_reduction <add>, %75, %cst_47 [0] : vector<8x8x128xf32> to vector<8x128xf32>
    %77 = arith.addf %73, %76 : vector<8x128xf32>
    %c48_48 = arith.constant 48 : index
    %c0_49 = arith.constant 0 : index
    %78 = vector.load %arg5[%c48_48, %c0_49] : memref<72x128xf32, #tpu.memory_space<vmem>>, vector<8x128xf32>
    tpu.vector_store %arg5[%c48_48, %c0_49], %77 {strides = array<i32>} : memref<72x128xf32, #tpu.memory_space<vmem>>, vector<8x128xf32>,
    %c56 = arith.constant 56 : index
    %c0_50 = arith.constant 0 : index
    %79 = vector.load %arg5[%c56, %c0_50] : memref<72x128xf32, #tpu.memory_space<vmem>>, vector<8x128xf32>
    %80 = vector.shape_cast %72 : vector<64x128xf32> to vector<8x8x128xf32>
    %cst_51 = arith.constant dense<0.000000e+00> : vector<8x128xf32>
    %81 = vector.multi_reduction <add>, %80, %cst_51 [0] : vector<8x8x128xf32> to vector<8x128xf32>
    %82 = arith.addf %79, %81 : vector<8x128xf32>
    %c56_52 = arith.constant 56 : index
    %c0_53 = arith.constant 0 : index
    %83 = vector.load %arg5[%c56_52, %c0_53] : memref<72x128xf32, #tpu.memory_space<vmem>>, vector<8x128xf32>
    tpu.vector_store %arg5[%c56_52, %c0_53], %82 {strides = array<i32>} : memref<72x128xf32, #tpu.memory_space<vmem>>, vector<8x128xf32>,
    %c64 = arith.constant 64 : index
    %c0_54 = arith.constant 0 : index
    %84 = vector.load %arg5[%c64, %c0_54] : memref<72x128xf32, #tpu.memory_space<vmem>>, vector<8x128xf32>
    %85 = arith.mulf %68, %5 : vector<64x128xf32>
    %86 = vector.shape_cast %85 : vector<64x128xf32> to vector<8x8x128xf32>
    %cst_55 = arith.constant dense<0.000000e+00> : vector<8x128xf32>
    %87 = vector.multi_reduction <add>, %86, %cst_55 [0] : vector<8x8x128xf32> to vector<8x128xf32>
    %88 = arith.addf %84, %87 : vector<8x128xf32>
    %c64_56 = arith.constant 64 : index
    %c0_57 = arith.constant 0 : index
    %89 = vector.load %arg5[%c64_56, %c0_57] : memref<72x128xf32, #tpu.memory_space<vmem>>, vector<8x128xf32>
    tpu.vector_store %arg5[%c64_56, %c0_57], %88 {strides = array<i32>} : memref<72x128xf32, #tpu.memory_space<vmem>>, vector<8x128xf32>,
    return
  }
  func.func @transform_0(%arg0: i32, %arg1: i32) -> (i32, i32) {
    %c1_i32 = arith.constant 1 : i32
    %0 = arith.muli %arg0, %c1_i32 : i32
    %1 = arith.addi %0, %arg1 : i32
    %c0_i32 = arith.constant 0 : i32
    %c0_i32_0 = arith.constant 0 : i32
    return %1, %c0_i32 : i32, i32
  }
  func.func @transform_1(%arg0: i32, %arg1: i32) -> (i32, i32) {
    %c1_i32 = arith.constant 1 : i32
    %0 = arith.muli %arg0, %c1_i32 : i32
    %1 = arith.addi %0, %arg1 : i32
    %c0_i32 = arith.constant 0 : i32
    %c0_i32_0 = arith.constant 0 : i32
    return %1, %c0_i32 : i32, i32
  }
  func.func @transform_2(%arg0: i32, %arg1: i32) -> (i32, i32) {
    %c1_i32 = arith.constant 1 : i32
    %0 = arith.muli %arg0, %c1_i32 : i32
    %1 = arith.addi %0, %arg1 : i32
    %c0_i32 = arith.constant 0 : i32
    %c0_i32_0 = arith.constant 0 : i32
    return %1, %c0_i32 : i32, i32
  }
  func.func @transform_3(%arg0: i32, %arg1: i32) -> (i32, i32) {
    %c0_i32 = arith.constant 0 : i32
    %c0_i32_0 = arith.constant 0 : i32
    return %arg0, %c0_i32 : i32, i32
  }
}

</mosaic_0001>

<bundles_post_ra>
// kernel: ordice_loss_diff.1
= control target key start
LH: loop header
LB: loop body
LE: loop exit
PB: predicated region body
PF: predicated region fallthrough
CT: control target
= control target key end

     0   :  { %s844_s0 = inlined_call_operand.vmem [shape: f32[64,128], index: 0, kind: input, shape index: {}]   ;;  %s845_s1 = inlined_call_operand.vmem [shape: f32[64,128], index: 1, kind: input, shape index: {}]   ;;  %s846_s2 = inlined_call_operand.vmem [shape: f32[64,128], index: 2, kind: input, shape index: {}]   ;;  %s847_s3 = inlined_call_operand.vmem [shape: f32[72,128], index: 3, kind: output, shape index: {}]  }
   0x1   :  { %v93_v0 = vld [vmem:[%s844_s0] sm:$0xff]  ;;  %v94_v1 = vld [vmem:[%s844_s0 + $0x8] sm:$0xff]  ;;  %v95_v2 = vld [vmem:[%s844_s0 + $0x10] sm:$0xff] }
   0x2   :  { %v96_v3 = vld [vmem:[%s844_s0 + $0x18] sm:$0xff]  ;;  %v97_v4 = vld [vmem:[%s844_s0 + $0x20] sm:$0xff]  ;;  %v98_v5 = vld [vmem:[%s844_s0 + $0x28] sm:$0xff]  ;;  %v117_v6 = vsub.f32 0.0, %v93_v0  ;;  %v118_v7 = vsub.f32 0.0, %v94_v1  ;;  %v119_v10 = vsub.f32 0.0, %v95_v2 }
   0x3   :  { %v99_v8 = vld [vmem:[%s844_s0 + $0x30] sm:$0xff]  ;;  %v100_v9 = vld [vmem:[%s844_s0 + $0x38] sm:$0xff]  ;;  %v120_v11 = vsub.f32 0.0, %v96_v3  ;;  %v121_v12 = vsub.f32 0.0, %v97_v4  ;;  %v122_v13 = vsub.f32 0.0, %v98_v5  ;;  %v557_v19 = vld [vmem:[%s845_s1] sm:$0xff] }
   0x4   :  { %v123_v14 = vsub.f32 0.0, %v99_v8  ;;  %v125_v15 = vmul.f32 1.442695, %v117_v6  ;;  %v124_v16 = vsub.f32 0.0, %v100_v9  ;;  %v127_v17 = vmul.f32 1.442695, %v118_v7 }
   0x5   :  { %v129_v18 = vmul.f32 1.442695, %v119_v10  ;;  %v562_v20 = vld [vmem:[%s845_s1 + $0x8] sm:$0xff]  ;;  %v131_v21 = vmul.f32 1.442695, %v120_v11  ;;  %v567_v25 = vld [vmem:[%s845_s1 + $0x10] sm:$0xff] }
   0x6   :  { %446 = vpow2.f32 %v125_v15  ;;  %v133_v22 = vmul.f32 1.442695, %v121_v12  ;;  %v135_v23 = vmul.f32 1.442695, %v122_v13  ;;  %v137_v24 = vmul.f32 1.442695, %v123_v14 }
   0x7   :  { %448 = vpow2.f32 %v127_v17  ;;  %v139_v26 = vmul.f32 1.442695, %v124_v16  ;;  %v572_v27 = vld [vmem:[%s846_s2] sm:$0xff]  ;;  %v577_v28 = vld [vmem:[%s846_s2 + $0x8] sm:$0xff]  ;;  %vm173_vm0 = vcmp.ge.f32.partialorder %v557_v19, 0.2 }
   0x8   :  { %450 = vpow2.f32 %v129_v18  ;;  %vm174_vm1 = vcmp.ge.f32.partialorder %v562_v20, 0.2  ;;  %v584_v29 = vld [vmem:[%s845_s1 + $0x18] sm:$0xff]  ;;  %v589_v30 = vld [vmem:[%s845_s1 + $0x20] sm:$0xff]  ;;  %vm267_vm2 = vcmp.ge.f32.partialorder %v557_v19, 0.5  ;;  %v595_v31 = vld [vmem:[%s845_s1 + $0x28] sm:$0xff] }
   0x9   :  { %452 = vpow2.f32 %v131_v21  ;;  %v600_v32 = vld [vmem:[%s845_s1 + $0x30] sm:$0xff]  ;;  %vm175_vm3 = vcmp.ge.f32.partialorder %v567_v25, 0.2  ;;  %vm268_vm4 = vcmp.ge.f32.partialorder %v562_v20, 0.5  ;;  %v612_v34 = vld [vmem:[%s845_s1 + $0x38] sm:$0xff]  ;;  %v620_v36 = vsel %vm173_vm0, %v572_v27, 0.0 }
   0xa   :  { %454 = vpow2.f32 %v133_v22  ;;  %v605_v33 = vld [vmem:[%s846_s2 + $0x10] sm:$0xff]  ;;  %v617_v35 = vld [vmem:[%s846_s2 + $0x18] sm:$0xff]  ;;  %v623_v37 = vsel %vm174_vm1, %v577_v28, 0.0  ;;  %vm269_vm5 = vcmp.ge.f32.partialorder %v567_v25, 0.5  ;;  %v629_v38 = vld [vmem:[%s846_s2 + $0x20] sm:$0xff]  ;;  %vm270_vm8 = vcmp.ge.f32.partialorder %v584_v29, 0.5 }
   0xb   :  { %456 = vpow2.f32 %v135_v23  ;;  %vm176_vm6 = vcmp.ge.f32.partialorder %v584_v29, 0.2  ;;  %vm177_vm7 = vcmp.ge.f32.partialorder %v589_v30, 0.2  ;;  %v208_v39 = vadd.f32 %v623_v37, %v620_v36  ;;  %v639_v40 = vld [vmem:[%s846_s2 + $0x28] sm:$0xff]  ;;  %v651_v42 = vld [vmem:[%s846_s2 + $0x30] sm:$0xff] }
   0xc   :  { %458 = vpow2.f32 %v137_v24  ;;  %vm178_vm9 = vcmp.ge.f32.partialorder %v595_v31, 0.2  ;;  %vm179_vm10 = vcmp.ge.f32.partialorder %v600_v32, 0.2  ;;  %v646_v41 = vsel %vm175_vm3, %v605_v33, 0.0  ;;  %v656_v43 = vld [vmem:[%s846_s2 + $0x38] sm:$0xff] }
   0xd   :  { %460 = vpow2.f32 %v139_v26  ;;  %vm180_vm11 = vcmp.ge.f32.partialorder %v612_v34, 0.2  ;;  %v209_v44 = vadd.f32 %v208_v39, %v646_v41  ;;  %v663_v45 = vsel %vm267_vm2, %v572_v27, 0.0 }
   0xe   :  { %v668_v46 = vsel %vm268_vm4, %v577_v28, 0.0  ;;  %v671_v47 = vsel %vm176_vm6, %v617_v35, 0.0  ;;  %v674_v48 = vsel %vm177_vm7, %v629_v38, 0.0  ;;  %vm271_vm12 = vcmp.ge.f32.partialorder %v589_v30, 0.5 }
   0xf   :  { %v302_v49 = vadd.f32 %v668_v46, %v663_v45  ;;  %v210_v50 = vadd.f32 %v209_v44, %v671_v47  ;;  %vm272_vm13 = vcmp.ge.f32.partialorder %v595_v31, 0.5  ;;  %vm273_vm14 = vcmp.ge.f32.partialorder %v600_v32, 0.5 }
  0x10   :  { %v685_v51 = vsel %vm269_vm5, %v605_v33, 0.0  ;;  %v690_v53 = vsel %vm178_vm9, %v639_v40, 0.0  ;;  %v695_v54 = vsel %vm179_vm10, %v651_v42, 0.0  ;;  %v698_v55 = vsel %vm180_vm11, %v656_v43, 0.0 }
  0x11   :  { %v303_v56 = vadd.f32 %v302_v49, %v685_v51  ;;  %v211_v59 = vadd.f32 %v210_v50, %v674_v48  ;;  %vm274_vm15 = vcmp.ge.f32.partialorder %v612_v34, 0.5  ;;  %v706_v60 = vsel %vm270_vm8, %v617_v35, 0.0 }
  0x12   :  { %v711_v61 = vsel %vm271_vm12, %v629_v38, 0.0  ;;  %v716_v1 = vsel %vm272_vm13, %v639_v40, 0.0  ;;  %v721_v2 = vsel %vm273_vm14, %v651_v42, 0.0  ;;  %vm361_vm0 = vcmp.ge.f32.partialorder %v557_v19, 0.8 }
  0x13   :  { %v447_v52 = vpop.eup %446  ;;  %v212_v6 = vadd.f32 %v211_v59, %v690_v53  ;;  %v304_v12 = vadd.f32 %v303_v56, %v706_v60  ;;  %vm362_vm1 = vcmp.ge.f32.partialorder %v562_v20, 0.8  ;;  %vm363_vm2 = vcmp.ge.f32.partialorder %v567_v25, 0.8 }
  0x14   :  { %v449_v57 = vpop.eup %448  ;;  %v141_v58 = vmul.f32 1.2214028, %v447_v52  ;;  %v235_v0 = vmul.f32 1.6487212, %v447_v52  ;;  %vm364_vm3 = vcmp.ge.f32.partialorder %v584_v29, 0.8 }
  0x15   :  { %v451_v62 = vpop.eup %450  ;;  %v142_v63 = vmul.f32 1.2214028, %v449_v57  ;;  %v236_v7 = vmul.f32 1.6487212, %v449_v57  ;;  %v213_v16 = vadd.f32 %v212_v6, %v695_v54  ;;  %vm365_vm4 = vcmp.ge.f32.partialorder %v589_v30, 0.8 }
  0x16   :  { %v453_v3 = vpop.eup %452  ;;  %v143_v4 = vmul.f32 1.2214028, %v451_v62  ;;  %v149_v5 = vadd.f32 1.0, %v141_v58  ;;  %v237_v11 = vmul.f32 1.6487212, %v451_v62  ;;  %v243_v50 = vadd.f32 1.0, %v235_v0 }
  0x17   :  { %v455_v8 = vpop.eup %454  ;;  %v144_v9 = vmul.f32 1.2214028, %v453_v3  ;;  %v150_v10 = vadd.f32 1.0, %v142_v63  ;;  %v238_v22 = vmul.f32 1.6487212, %v453_v3  ;;  %v214_v39 = vadd.f32 %v213_v16, %v698_v55 }
  0x18   :  { %v457_v13 = vpop.eup %456  ;;  %v145_v14 = vmul.f32 1.2214028, %v455_v8  ;;  %v151_v15 = vadd.f32 1.0, %v143_v4  ;;  %462 = vrcp.f32 %v149_v5  ;;  %v239_v58 = vmul.f32 1.6487212, %v455_v8 }
  0x19   :  { %v459_v17 = vpop.eup %458  ;;  %v146_v18 = vmul.f32 1.2214028, %v457_v13  ;;  %v152_v21 = vadd.f32 1.0, %v144_v9  ;;  %464 = vrcp.f32 %v150_v10  ;;  %v240_v63 = vmul.f32 1.6487212, %v457_v13  ;;  %216 = vst [vmem:[%s847_s3 + $0x8] sm:$0xff] %v214_v39 }
  0x1a   :  { %v461_v23 = vpop.eup %460  ;;  %v147_v24 = vmul.f32 1.2214028, %v459_v17  ;;  %v153_v26 = vadd.f32 1.0, %v145_v14  ;;  %466 = vrcp.f32 %v151_v15  ;;  %v244_v4 = vadd.f32 1.0, %v236_v7 }
  0x1b   :  { %v148_v44 = vmul.f32 1.2214028, %v461_v23  ;;  %v154_v49 = vadd.f32 1.0, %v146_v18  ;;  %468 = vrcp.f32 %v152_v21  ;;  %v241_v5 = vmul.f32 1.6487212, %v459_v17 }
  0x1c   :  { %v155_v56 = vadd.f32 1.0, %v147_v24  ;;  %470 = vrcp.f32 %v153_v26  ;;  %v242_v6 = vmul.f32 1.6487212, %v461_v23  ;;  %v245_v9 = vadd.f32 1.0, %v237_v11 }
  0x1d   :  { %v156_v59 = vadd.f32 1.0, %v148_v44  ;;  %472 = vrcp.f32 %v154_v49  ;;  %v246_v10 = vadd.f32 1.0, %v238_v22  ;;  %v733_v0 = vsel %vm274_vm15, %v656_v43, 0.0 }
  0x1e   :  { %474 = vrcp.f32 %v155_v56  ;;  %v329_v14 = vmul.f32 2.2255409, %v447_v52  ;;  %v247_v15 = vadd.f32 1.0, %v239_v58  ;;  %v305_v7 = vadd.f32 %v304_v12, %v711_v61 }
  0x1f   :  { %476 = vrcp.f32 %v156_v59  ;;  %v330_v16 = vmul.f32 2.2255409, %v449_v57  ;;  %v248_v18 = vadd.f32 1.0, %v240_v63  ;;  %v331_v21 = vmul.f32 2.2255409, %v451_v62 }
  0x20   :  { %478 = vrcp.f32 %v243_v50  ;;  %v332_v24 = vmul.f32 2.2255409, %v453_v3  ;;  %v249_v11 = vadd.f32 1.0, %v241_v5  ;;  %v250_v26 = vadd.f32 1.0, %v242_v6 }
  0x21   :  { %480 = vrcp.f32 %v244_v4  ;;  %v306_v22 = vadd.f32 %v305_v7, %v716_v1  ;;  %v333_v39 = vmul.f32 2.2255409, %v455_v8  ;;  %v334_v44 = vmul.f32 2.2255409, %v457_v13 }
  0x22   :  { %482 = vrcp.f32 %v245_v9  ;;  %v335_v52 = vmul.f32 2.2255409, %v459_v17  ;;  %v336_v12 = vmul.f32 2.2255409, %v461_v23  ;;  %v337_v57 = vadd.f32 1.0, %v329_v14 }
  0x23   :  { %484 = vrcp.f32 %v246_v10  ;;  %v307_v49 = vadd.f32 %v306_v22, %v721_v2  ;;  %v338_v62 = vadd.f32 1.0, %v330_v16  ;;  %v339_v3 = vadd.f32 1.0, %v331_v21 }
  0x24   :  { %486 = vrcp.f32 %v247_v15  ;;  %v340_v56 = vadd.f32 1.0, %v332_v24  ;;  %v341_v23 = vadd.f32 1.0, %v333_v39  ;;  %v754_v16 = vadd.f32 1.0, %v334_v44 }
  0x25   :  { %v463_v50 = vpop.eup %462  ;;  %488 = vrcp.f32 %v248_v18  ;;  %v308_v8 = vadd.f32 %v307_v49, %v733_v0  ;;  %v758_v18 = vadd.f32 1.0, %v336_v12  ;;  %v767_v44 = vsel %vm361_vm0, %v572_v27, 0.0 }
  0x26   :  { %v465_v58 = vpop.eup %464  ;;  %v190_v59 = vmul.f32 %v463_v50, %v620_v36  ;;  %v218_v63 = vmul.f32 %v463_v50, %v572_v27  ;;  %490 = vrcp.f32 %v249_v11  ;;  %v372_v20 = vsel %vm364_vm3, %v617_v35, 0.0 }
  0x27   :  { %v467_v13 = vpop.eup %466  ;;  %v191_v17 = vmul.f32 %v465_v58, %v623_v37  ;;  %v219_v4 = vmul.f32 %v465_v58, %v577_v28  ;;  %492 = vrcp.f32 %v250_v26  ;;  %310 = vst [vmem:[%s847_s3 + $0x20] sm:$0xff] %v308_v8  ;;  %vm366_vm5 = vcmp.ge.f32.partialorder %v595_v31, 0.8 }
  0x28   :  { %v469_v5 = vpop.eup %468  ;;  %v192_v6 = vmul.f32 %v467_v13, %v646_v41  ;;  %v220_v36 = vmul.f32 %v467_v13, %v605_v33  ;;  %494 = vrcp.f32 %v337_v57  ;;  %v756_v41 = vadd.f32 1.0, %v335_v52 }
  0x29   :  { %v471_v9 = vpop.eup %470  ;;  %v193_v10 = vmul.f32 %v469_v5, %v671_v47  ;;  %v198_v14 = vadd.f32 %v191_v17, %v190_v59  ;;  %v221_v37 = vmul.f32 %v469_v5, %v617_v35  ;;  %v226_v15 = vadd.f32 %v219_v4, %v218_v63 }
  0x2a   :  { %v473_v7 = vpop.eup %472  ;;  %496 = vrcp.f32 %v338_v62  ;;  %v194_v47 = vmul.f32 %v471_v9, %v674_v48  ;;  %v222_v11 = vmul.f32 %v471_v9, %v629_v38  ;;  %vm367_vm6 = vcmp.ge.f32.partialorder %v600_v32, 0.8 }
  0x2b   :  { %v475_v21 = vpop.eup %474  ;;  %v199_v24 = vadd.f32 %v198_v14, %v192_v6  ;;  %v227_v26 = vadd.f32 %v226_v15, %v220_v36  ;;  %v195_v39 = vmul.f32 %v473_v7, %v690_v53  ;;  %v223_v49 = vmul.f32 %v473_v7, %v639_v40 }
  0x2c   :  { %v477_v22 = vpop.eup %476  ;;  %498 = vrcp.f32 %v339_v3  ;;  %v196_v12 = vmul.f32 %v475_v21, %v695_v54  ;;  %v224_v48 = vmul.f32 %v475_v21, %v651_v42  ;;  %v370_v14 = vsel %vm362_vm1, %v577_v28, 0.0 }
  0x2d   :  { %v479_v52 = vpop.eup %478  ;;  %v200_v57 = vadd.f32 %v199_v24, %v193_v10  ;;  %v228_v50 = vadd.f32 %v227_v26, %v221_v37  ;;  %v197_v58 = vmul.f32 %v477_v22, %v698_v55  ;;  %500 = vrcp.f32 %v340_v56 }
  0x2e   :  { %v481_v62 = vpop.eup %480  ;;  %v284_v53 = vmul.f32 %v479_v52, %v663_v45  ;;  %v312_v59 = vmul.f32 %v479_v52, %v572_v27  ;;  %v225_v17 = vmul.f32 %v477_v22, %v656_v43  ;;  %502 = vrcp.f32 %v341_v23 }
  0x2f   :  { %v483_v19 = vpop.eup %482  ;;  %v201_v3 = vadd.f32 %v200_v57, %v194_v47  ;;  %v229_v63 = vadd.f32 %v228_v50, %v222_v11  ;;  %v285_v8 = vmul.f32 %v481_v62, %v668_v46  ;;  %v313_v54 = vmul.f32 %v481_v62, %v577_v28 }
  0x30   :  { %v485_v13 = vpop.eup %484  ;;  %v286_v4 = vmul.f32 %v483_v19, %v685_v51  ;;  %v314_v55 = vmul.f32 %v483_v19, %v605_v33  ;;  %v371_v51 = vsel %vm363_vm2, %v605_v33, 0.0  ;;  %504 = vrcp.f32 %v754_v16 }
  0x31   :  { %v487_v45 = vpop.eup %486  ;;  %v202_v5 = vadd.f32 %v201_v3, %v195_v39  ;;  %v230_v56 = vadd.f32 %v229_v63, %v223_v49  ;;  %v287_v6 = vmul.f32 %v485_v13, %v706_v60  ;;  %v292_v36 = vadd.f32 %v285_v8, %v284_v53 }
  0x32   :  { %v489_v9 = vpop.eup %488  ;;  %v315_v10 = vmul.f32 %v485_v13, %v617_v35  ;;  %v320_v46 = vadd.f32 %v313_v54, %v312_v59  ;;  %v288_v7 = vmul.f32 %v487_v45, %v711_v61  ;;  %v316_v24 = vmul.f32 %v487_v45, %v629_v38 }
  0x33   :  { %v491_v37 = vpop.eup %490  ;;  %v203_v23 = vadd.f32 %v202_v5, %v196_v12  ;;  %v231_v15 = vadd.f32 %v230_v56, %v224_v48  ;;  %v293_v21 = vadd.f32 %v292_v36, %v286_v4  ;;  %v289_v47 = vmul.f32 %v489_v9, %v716_v1 }
  0x34   :  { %v493_v60 = vpop.eup %492  ;;  %v321_v11 = vadd.f32 %v320_v46, %v314_v55  ;;  %v290_v39 = vmul.f32 %v491_v37, %v721_v2  ;;  %v317_v52 = vmul.f32 %v489_v9, %v639_v40  ;;  %v318_v61 = vmul.f32 %v491_v37, %v651_v42 }
  0x35   :  { %v495_v26 = vpop.eup %494  ;;  %v204_v22 = vadd.f32 %v203_v23, %v197_v58  ;;  %v232_v25 = vadd.f32 %v231_v15, %v225_v17  ;;  %v294_v49 = vadd.f32 %v293_v21, %v287_v6  ;;  %506 = vrcp.f32 %v756_v41 }
  0x36   :  { %v322_v12 = vadd.f32 %v321_v11, %v315_v10  ;;  %v291_v29 = vmul.f32 %v493_v60, %v733_v0  ;;  %v319_v48 = vmul.f32 %v493_v60, %v656_v43  ;;  %508 = vrcp.f32 %v758_v18 }
  0x37   :  { %v497_v1 = vpop.eup %496  ;;  %v295_v57 = vadd.f32 %v294_v49, %v288_v7  ;;  %206 = vst [vmem:[%s847_s3] sm:$0xff] %v204_v22  ;;  %234 = vst [vmem:[%s847_s3 + $0x10] sm:$0xff] %v232_v25  ;;  %v373_v41 = vsel %vm365_vm4, %v629_v38, 0.0  ;;  %v378_v0 = vmul.f32 %v495_v26, %v767_v44  ;;  %v396_v18 = vadd.f32 %v370_v14, %v767_v44 }
  0x38   :  { %v323_v50 = vadd.f32 %v322_v12, %v316_v24  ;;  %v379_v62 = vmul.f32 %v497_v1, %v370_v14  ;;  %v406_v59 = vmul.f32 %v495_v26, %v572_v27  ;;  %v407_v8 = vmul.f32 %v497_v1, %v577_v28 }
  0x39   :  { %v499_v2 = vpop.eup %498  ;;  %v296_v16 = vadd.f32 %v295_v57, %v289_v47  ;;  %v397_v17 = vadd.f32 %v396_v18, %v371_v51  ;;  %vm368_vm7 = vcmp.ge.f32.partialorder %v612_v34, 0.8  ;;  %v375_v32 = vsel %vm367_vm6, %v651_v42, 0.0 }
  0x3a   :  { %v324_v58 = vadd.f32 %v323_v50, %v317_v52  ;;  %v380_v53 = vmul.f32 %v499_v2, %v371_v51  ;;  %v501_v19 = vpop.eup %500  ;;  %v386_v63 = vadd.f32 %v379_v62, %v378_v0  ;;  %v408_v54 = vmul.f32 %v499_v2, %v605_v33 }
  0x3b   :  { %v297_v3 = vadd.f32 %v296_v16, %v290_v39  ;;  %v381_v30 = vmul.f32 %v501_v19, %v372_v20  ;;  %v503_v4 = vpop.eup %502  ;;  %v409_v5 = vmul.f32 %v501_v19, %v617_v35  ;;  %v414_v44 = vadd.f32 %v407_v8, %v406_v59 }
  0x3c   :  { %v325_v13 = vadd.f32 %v324_v58, %v318_v61  ;;  %v387_v45 = vadd.f32 %v386_v63, %v380_v53  ;;  %v382_v27 = vmul.f32 %v503_v4, %v373_v41  ;;  %v398_v6 = vadd.f32 %v397_v17, %v372_v20 }
  0x3d   :  { %v298_v55 = vadd.f32 %v297_v3, %v291_v29  ;;  %v410_v28 = vmul.f32 %v503_v4, %v629_v38  ;;  %v415_v33 = vadd.f32 %v414_v44, %v408_v54  ;;  %v374_v35 = vsel %vm366_vm5, %v639_v40, 0.0  ;;  %v505_v14 = vpop.eup %504 }
  0x3e   :  { %v326_v56 = vadd.f32 %v325_v13, %v319_v48  ;;  %v388_v36 = vadd.f32 %v387_v45, %v381_v30  ;;  %v399_v9 = vadd.f32 %v398_v6, %v373_v41  ;;  %v376_v34 = vsel %vm368_vm7, %v656_v43, 0.0 }
  0x3f   :  { %300 = vst [vmem:[%s847_s3 + $0x18] sm:$0xff] %v298_v55  ;;  %v416_v10 = vadd.f32 %v415_v33, %v409_v5  ;;  %v383_v23 = vmul.f32 %v505_v14, %v374_v35  ;;  %v411_v7 = vmul.f32 %v505_v14, %v639_v40 }
  0x40   :  { %328 = vst [vmem:[%s847_s3 + $0x28] sm:$0xff] %v326_v56  ;;  %v389_v38 = vadd.f32 %v388_v36, %v382_v27  ;;  %v400_v46 = vadd.f32 %v399_v9, %v374_v35 }
  0x41   :  { %v417_v51 = vadd.f32 %v416_v10, %v410_v28 }
  0x42   :  { %v507_v37 = vpop.eup %506  ;;  %v401_v15 = vadd.f32 %v400_v46, %v375_v32  ;;  %v390_v24 = vadd.f32 %v389_v38, %v383_v23 }
  0x43   :  { %v509_v31 = vpop.eup %508  ;;  %v384_v21 = vmul.f32 %v507_v37, %v375_v32  ;;  %v412_v60 = vmul.f32 %v507_v37, %v651_v42  ;;  %v418_v26 = vadd.f32 %v417_v51, %v411_v7 }
  0x44   :  { %v385_v47 = vmul.f32 %v509_v31, %v376_v34  ;;  %v402_v11 = vadd.f32 %v401_v15, %v376_v34  ;;  %v413_v20 = vmul.f32 %v509_v31, %v656_v43 }
  0x45   :  { %v391_v22 = vadd.f32 %v390_v24, %v384_v21  ;;  %v419_v25 = vadd.f32 %v418_v26, %v412_v60 }
  0x46   :  { %404 = vst [vmem:[%s847_s3 + $0x38] sm:$0xff] %v402_v11 }
  0x47   :  { %v392_v39 = vadd.f32 %v391_v22, %v385_v47  ;;  %v420_v49 = vadd.f32 %v419_v25, %v413_v20 }
  0x49   :  { %394 = vst [vmem:[%s847_s3 + $0x30] sm:$0xff] %v392_v39  ;;  %422 = vst [vmem:[%s847_s3 + $0x40] sm:$0xff] %v420_v49 }

</bundles_post_ra>
